<compile_context>
chip_gen: v7x
topology: tpu7x:2x2x1
jax: 0.10.0
libtpu: 0.0.40
codegen_flags: <defaults>
</compile_context>

<pallas_src>
import jax
import jax.numpy as jnp
from jax.experimental import pallas as pl
from jax.experimental.pallas import tpu as pltpu  # noqa: F401  (kept for TPU-specific tuning hooks)

# ---- problem sizes (small, consistent with the module) ----
BATCH = 2
SEQ = 8
D_EMB = 32
HEADS = 4
HEAD_DIM = D_EMB // HEADS
D_FF = 64
LN_EPS = 1e-5


def _layer_norm(x, gamma, beta):
    mean = jnp.mean(x, axis=-1, keepdims=True)
    var = jnp.mean((x - mean) ** 2, axis=-1, keepdims=True)
    return (x - mean) * jax.lax.rsqrt(var + LN_EPS) * gamma + beta


def encoder_block_kernel(mask_ref, src_ref,
                         wq_ref, bq_ref, wo_ref, bo_ref,
                         ln1_g_ref, ln1_b_ref,
                         w1_ref, b1_ref, w2_ref, b2_ref,
                         ln2_g_ref, ln2_b_ref,
                         out_ref):
    N, S, D = src_ref.shape
    x = src_ref[...].reshape(N * S, D)          # (N*S, D): whole batch, 2-D lane-dense rows

    # ---- MultiHeadAttention (fc_q used for q, k and v, as in the reference) ----
    proj = jnp.dot(x, wq_ref[...], preferred_element_type=jnp.float32) + bq_ref[...]

    # Collapsed 'nhqk,nvhd->nqhd' attention (see header comment):
    #   per-batch value-sum, broadcast over query rows; NaN iff every key of that
    #   batch element is masked (matches the reference's 0/0 softmax NaN).
    vsum = jnp.sum(proj.reshape(N, S, D), axis=1, keepdims=True)            # (N, 1, D)
    n_valid_keys = jnp.sum((mask_ref[...] != 0.0).astype(jnp.float32),
                           axis=-1, keepdims=True)                          # (N, 1, 1)
    guard = jnp.where(n_valid_keys > 0.0, 1.0, jnp.nan)                     # fully-masked -> NaN
    attn = jnp.broadcast_to(guard * vsum, (N, S, D)).reshape(N * S, D)      # (N*S, D)

    out_sa = jnp.dot(attn, wo_ref[...], preferred_element_type=jnp.float32) + bo_ref[...]

    # dropout == identity (eval mode); residual + LayerNorm 1
    y = _layer_norm(x + out_sa, ln1_g_ref[...], ln1_b_ref[...])

    # ---- Position-wise feed-forward ----
    h1 = jnp.maximum(
        jnp.dot(y, w1_ref[...], preferred_element_type=jnp.float32) + b1_ref[...], 0.0)
    ff = jnp.dot(h1, w2_ref[...], preferred_element_type=jnp.float32) + b2_ref[...]

    # residual + LayerNorm 2
    out_ref[...] = _layer_norm(y + ff, ln2_g_ref[...], ln2_b_ref[...])


def encoder_block_pallas(src, mask, params):
    N, S, D = src.shape
    weight_order = ("wq", "bq", "wo", "bo", "ln1_g", "ln1_b",
                    "w1", "b1", "w2", "b2", "ln2_g", "ln2_b")
    weights = [params[k] for k in weight_order]

    # Single invocation, no grid: default whole-array VMEM BlockSpecs for every operand
    # (total live data ~10 KB -- fits comfortably on v5e/v6e/v7x).
    # TODO(synk): if scaled to production S/D/D_FF, reintroduce a parallel batch/row grid
    # (v7x 2-TC) and tile D_FF / S against v7x's 64 MiB VMEM.
    out_flat = pl.pallas_call(
        encoder_block_kernel,
        out_shape=jax.ShapeDtypeStruct((N * S, D), jnp.float32),
    )(mask, src, *weights)
    return out_flat.reshape(N, S, D)


# ---- pure-JAX reference, mirroring the PyTorch forward literally ----
def encoder_block_ref(src, mask, p):
    N, S, D = src.shape
    proj = src @ p["wq"] + p["bq"]                                  # fc_q on q, k, v
    qh = proj.reshape(N, S, HEADS, HEAD_DIM)
    energy = jnp.einsum("nqhd,nkhd->nhqk", qh, qh)
    energy = jnp.where(mask[:, :, None, :] == 0.0, -jnp.inf, energy)
    attn = jax.nn.softmax(energy / HEAD_DIM ** 0.5, axis=3)
    out = jnp.einsum("nhqk,nvhd->nqhd", attn, qh).reshape(N, S, D)
    out_sa = out @ p["wo"] + p["bo"]
    y = _layer_norm(src + out_sa, p["ln1_g"], p["ln1_b"])
    ff = jnp.maximum(y @ p["w1"] + p["b1"], 0.0) @ p["w2"] + p["b2"]
    return _layer_norm(y + ff, p["ln2_g"], p["ln2_b"])


def init_params(key):
    ks = jax.random.split(key, 8)
    s = 0.1
    return {
        "wq": jax.random.normal(ks[0], (D_EMB, D_EMB), jnp.float32) * s,   # (in, out) = W_q.T
        "bq": jax.random.normal(ks[1], (1, D_EMB), jnp.float32) * s,
        "wo": jax.random.normal(ks[2], (D_EMB, D_EMB), jnp.float32) * s,
        "bo": jax.random.normal(ks[3], (1, D_EMB), jnp.float32) * s,
        "ln1_g": jnp.ones((1, D_EMB), jnp.float32),
        "ln1_b": jnp.zeros((1, D_EMB), jnp.float32),
        "w1": jax.random.normal(ks[4], (D_EMB, D_FF), jnp.float32) * s,
        "b1": jax.random.normal(ks[5], (1, D_FF), jnp.float32) * s,
        "w2": jax.random.normal(ks[6], (D_FF, D_EMB), jnp.float32) * s,
        "b2": jax.random.normal(ks[7], (1, D_EMB), jnp.float32) * s,
        "ln2_g": jnp.ones((1, D_EMB), jnp.float32),
        "ln2_b": jnp.zeros((1, D_EMB), jnp.float32),
    }


if __name__ == "__main__":
    key = jax.random.PRNGKey(0)
    k_src, k_par = jax.random.split(key)

    src = jax.random.normal(k_src, (BATCH, SEQ, D_EMB), jnp.float32)
    # key-padding mask: batch 1 has its last two key positions masked out
    mask = jnp.ones((BATCH, 1, SEQ), jnp.float32).at[1, 0, SEQ - 2:].set(0.0)
    params = init_params(k_par)

    out = jax.block_until_ready(encoder_block_pallas(src, mask, params))
    ref = jax.block_until_ready(encoder_block_ref(src, mask, params))

    assert out.shape == (BATCH, SEQ, D_EMB)
    assert jnp.all(jnp.isfinite(out))
    assert jnp.allclose(out, ref, rtol=1e-3, atol=1e-3), float(jnp.max(jnp.abs(out - ref)))

    print("KERNEL_OK")
</pallas_src>

<mosaic_0001>
module attributes {stable_mosaic.version = 11 : i64} {
  func.func @encoder_block_kernel(%arg0: memref<2x1x8xf32, #tpu.memory_space<vmem>>, %arg1: memref<2x8x32xf32, #tpu.memory_space<vmem>>, %arg2: memref<32x32xf32, #tpu.memory_space<vmem>>, %arg3: memref<1x32xf32, #tpu.memory_space<vmem>>, %arg4: memref<32x32xf32, #tpu.memory_space<vmem>>, %arg5: memref<1x32xf32, #tpu.memory_space<vmem>>, %arg6: memref<1x32xf32, #tpu.memory_space<vmem>>, %arg7: memref<1x32xf32, #tpu.memory_space<vmem>>, %arg8: memref<32x64xf32, #tpu.memory_space<vmem>>, %arg9: memref<1x64xf32, #tpu.memory_space<vmem>>, %arg10: memref<64x32xf32, #tpu.memory_space<vmem>>, %arg11: memref<1x32xf32, #tpu.memory_space<vmem>>, %arg12: memref<1x32xf32, #tpu.memory_space<vmem>>, %arg13: memref<1x32xf32, #tpu.memory_space<vmem>>, %arg14: memref<16x32xf32, #tpu.memory_space<vmem>>) attributes {dimension_semantics = [], scalar_prefetch = 0 : i64, scratch_operands = 0 : i64, tpu.core_type = #tpu.core_type<tc>} {
    %c0 = arith.constant 0 : index
    %c0_0 = arith.constant 0 : index
    %c0_1 = arith.constant 0 : index
    %0 = vector.load %arg1[%c0, %c0_0, %c0_1] : memref<2x8x32xf32, #tpu.memory_space<vmem>>, vector<2x8x32xf32>
    %1 = vector.shape_cast %0 : vector<2x8x32xf32> to vector<16x32xf32>
    %c0_2 = arith.constant 0 : index
    %c0_3 = arith.constant 0 : index
    %2 = vector.load %arg2[%c0_2, %c0_3] : memref<32x32xf32, #tpu.memory_space<vmem>>, vector<32x32xf32>
    %cst = arith.constant dense<0.000000e+00> : vector<16x32xf32>
    %3 = tpu.matmul %1, %2, %cst {dimension_numbers = #tpu.dot_dimension_numbers<[1], [0], [0], [1], [0, 0, 1, 1], [], []>} : vector<16x32xf32>, vector<32x32xf32>, vector<16x32xf32> -> vector<16x32xf32>
    %c0_4 = arith.constant 0 : index
    %c0_5 = arith.constant 0 : index
    %4 = vector.load %arg3[%c0_4, %c0_5] : memref<1x32xf32, #tpu.memory_space<vmem>>, vector<1x32xf32>
    %5 = vector.broadcast %4 : vector<1x32xf32> to vector<16x32xf32>
    %6 = arith.addf %3, %5 : vector<16x32xf32>
    %7 = vector.shape_cast %6 : vector<16x32xf32> to vector<2x8x32xf32>
    %cst_6 = arith.constant dense<0.000000e+00> : vector<2x32xf32>
    %8 = vector.multi_reduction <add>, %7, %cst_6 [1] : vector<2x8x32xf32> to vector<2x32xf32>
    %9 = vector.shape_cast %8 : vector<2x32xf32> to vector<2x1x32xf32>
    %c0_7 = arith.constant 0 : index
    %c0_8 = arith.constant 0 : index
    %c0_9 = arith.constant 0 : index
    %10 = vector.load %arg0[%c0_7, %c0_8, %c0_9] : memref<2x1x8xf32, #tpu.memory_space<vmem>>, vector<2x1x8xf32>
    %cst_10 = arith.constant 0.000000e+00 : f32
    %11 = vector.broadcast %cst_10 : f32 to vector<2x1x8xf32>
    %12 = arith.cmpf one, %10, %11 : vector<2x1x8xf32>
    %13 = arith.extui %12 : vector<2x1x8xi1> to vector<2x1x8xi32>
    %14 = arith.sitofp %13 : vector<2x1x8xi32> to vector<2x1x8xf32>
    %cst_11 = arith.constant dense<0.000000e+00> : vector<2x1xf32>
    %15 = vector.multi_reduction <add>, %14, %cst_11 [2] : vector<2x1x8xf32> to vector<2x1xf32>
    %16 = vector.shape_cast %15 : vector<2x1xf32> to vector<2x1x1xf32>
    %cst_12 = arith.constant 0.000000e+00 : f32
    %17 = vector.broadcast %cst_12 : f32 to vector<2x1x1xf32>
    %18 = arith.cmpf ogt, %16, %17 : vector<2x1x1xf32>
    %cst_13 = arith.constant 1.000000e+00 : f32
    %cst_14 = arith.constant 0x7FC00000 : f32
    %19 = vector.broadcast %cst_13 : f32 to vector<2x1x1xf32>
    %20 = vector.broadcast %cst_14 : f32 to vector<2x1x1xf32>
    %21 = arith.select %18, %19, %20 : vector<2x1x1xi1>, vector<2x1x1xf32>
    %22 = vector.broadcast %21 : vector<2x1x1xf32> to vector<2x1x32xf32>
    %23 = arith.mulf %22, %9 : vector<2x1x32xf32>
    %24 = vector.shape_cast %23 : vector<2x1x32xf32> to vector<2x1x32xf32>
    %25 = vector.broadcast %24 : vector<2x1x32xf32> to vector<2x8x32xf32>
    %26 = vector.shape_cast %25 : vector<2x8x32xf32> to vector<16x32xf32>
    %c0_15 = arith.constant 0 : index
    %c0_16 = arith.constant 0 : index
    %27 = vector.load %arg4[%c0_15, %c0_16] : memref<32x32xf32, #tpu.memory_space<vmem>>, vector<32x32xf32>
    %cst_17 = arith.constant dense<0.000000e+00> : vector<16x32xf32>
    %28 = tpu.matmul %26, %27, %cst_17 {dimension_numbers = #tpu.dot_dimension_numbers<[1], [0], [0], [1], [0, 0, 1, 1], [], []>} : vector<16x32xf32>, vector<32x32xf32>, vector<16x32xf32> -> vector<16x32xf32>
    %c0_18 = arith.constant 0 : index
    %c0_19 = arith.constant 0 : index
    %29 = vector.load %arg5[%c0_18, %c0_19] : memref<1x32xf32, #tpu.memory_space<vmem>>, vector<1x32xf32>
    %30 = vector.broadcast %29 : vector<1x32xf32> to vector<16x32xf32>
    %31 = arith.addf %28, %30 : vector<16x32xf32>
    %32 = arith.addf %1, %31 : vector<16x32xf32>
    %c0_20 = arith.constant 0 : index
    %c0_21 = arith.constant 0 : index
    %33 = vector.load %arg6[%c0_20, %c0_21] : memref<1x32xf32, #tpu.memory_space<vmem>>, vector<1x32xf32>
    %c0_22 = arith.constant 0 : index
    %c0_23 = arith.constant 0 : index
    %34 = vector.load %arg7[%c0_22, %c0_23] : memref<1x32xf32, #tpu.memory_space<vmem>>, vector<1x32xf32>
    %cst_24 = arith.constant dense<0.000000e+00> : vector<16xf32>
    %35 = vector.multi_reduction <add>, %32, %cst_24 [1] : vector<16x32xf32> to vector<16xf32>
    %36 = vector.shape_cast %35 : vector<16xf32> to vector<16x1xf32>
    %cst_25 = arith.constant 3.200000e+01 : f32
    %37 = vector.broadcast %cst_25 : f32 to vector<16x1xf32>
    %38 = arith.divf %36, %37 : vector<16x1xf32>
    %39 = vector.broadcast %38 : vector<16x1xf32> to vector<16x32xf32>
    %40 = arith.subf %32, %39 : vector<16x32xf32>
    %41 = arith.mulf %40, %40 : vector<16x32xf32>
    %cst_26 = arith.constant dense<0.000000e+00> : vector<16xf32>
    %42 = vector.multi_reduction <add>, %41, %cst_26 [1] : vector<16x32xf32> to vector<16xf32>
    %43 = vector.shape_cast %42 : vector<16xf32> to vector<16x1xf32>
    %cst_27 = arith.constant 3.200000e+01 : f32
    %44 = vector.broadcast %cst_27 : f32 to vector<16x1xf32>
    %45 = arith.divf %43, %44 : vector<16x1xf32>
    %46 = vector.broadcast %38 : vector<16x1xf32> to vector<16x32xf32>
    %47 = arith.subf %32, %46 : vector<16x32xf32>
    %cst_28 = arith.constant 9.99999974E-6 : f32
    %48 = vector.broadcast %cst_28 : f32 to vector<16x1xf32>
    %49 = arith.addf %45, %48 : vector<16x1xf32>
    %50 = math.rsqrt %49 : vector<16x1xf32>
    %51 = vector.broadcast %50 : vector<16x1xf32> to vector<16x32xf32>
    %52 = arith.mulf %47, %51 : vector<16x32xf32>
    %53 = vector.broadcast %33 : vector<1x32xf32> to vector<16x32xf32>
    %54 = arith.mulf %52, %53 : vector<16x32xf32>
    %55 = vector.broadcast %34 : vector<1x32xf32> to vector<16x32xf32>
    %56 = arith.addf %54, %55 : vector<16x32xf32>
    %c0_29 = arith.constant 0 : index
    %c0_30 = arith.constant 0 : index
    %57 = vector.load %arg8[%c0_29, %c0_30] : memref<32x64xf32, #tpu.memory_space<vmem>>, vector<32x64xf32>
    %cst_31 = arith.constant dense<0.000000e+00> : vector<16x64xf32>
    %58 = tpu.matmul %56, %57, %cst_31 {dimension_numbers = #tpu.dot_dimension_numbers<[1], [0], [0], [1], [0, 0, 1, 1], [], []>} : vector<16x32xf32>, vector<32x64xf32>, vector<16x64xf32> -> vector<16x64xf32>
    %c0_32 = arith.constant 0 : index
    %c0_33 = arith.constant 0 : index
    %59 = vector.load %arg9[%c0_32, %c0_33] : memref<1x64xf32, #tpu.memory_space<vmem>>, vector<1x64xf32>
    %60 = vector.broadcast %59 : vector<1x64xf32> to vector<16x64xf32>
    %61 = arith.addf %58, %60 : vector<16x64xf32>
    %cst_34 = arith.constant 0.000000e+00 : f32
    %62 = vector.broadcast %cst_34 : f32 to vector<16x64xf32>
    %63 = arith.maximumf %61, %62 : vector<16x64xf32>
    %c0_35 = arith.constant 0 : index
    %c0_36 = arith.constant 0 : index
    %64 = vector.load %arg10[%c0_35, %c0_36] : memref<64x32xf32, #tpu.memory_space<vmem>>, vector<64x32xf32>
    %cst_37 = arith.constant dense<0.000000e+00> : vector<16x32xf32>
    %65 = tpu.matmul %63, %64, %cst_37 {dimension_numbers = #tpu.dot_dimension_numbers<[1], [0], [0], [1], [0, 0, 1, 1], [], []>} : vector<16x64xf32>, vector<64x32xf32>, vector<16x32xf32> -> vector<16x32xf32>
    %c0_38 = arith.constant 0 : index
    %c0_39 = arith.constant 0 : index
    %66 = vector.load %arg11[%c0_38, %c0_39] : memref<1x32xf32, #tpu.memory_space<vmem>>, vector<1x32xf32>
    %67 = vector.broadcast %66 : vector<1x32xf32> to vector<16x32xf32>
    %68 = arith.addf %65, %67 : vector<16x32xf32>
    %69 = arith.addf %56, %68 : vector<16x32xf32>
    %c0_40 = arith.constant 0 : index
    %c0_41 = arith.constant 0 : index
    %70 = vector.load %arg12[%c0_40, %c0_41] : memref<1x32xf32, #tpu.memory_space<vmem>>, vector<1x32xf32>
    %c0_42 = arith.constant 0 : index
    %c0_43 = arith.constant 0 : index
    %71 = vector.load %arg13[%c0_42, %c0_43] : memref<1x32xf32, #tpu.memory_space<vmem>>, vector<1x32xf32>
    %cst_44 = arith.constant dense<0.000000e+00> : vector<16xf32>
    %72 = vector.multi_reduction <add>, %69, %cst_44 [1] : vector<16x32xf32> to vector<16xf32>
    %73 = vector.shape_cast %72 : vector<16xf32> to vector<16x1xf32>
    %cst_45 = arith.constant 3.200000e+01 : f32
    %74 = vector.broadcast %cst_45 : f32 to vector<16x1xf32>
    %75 = arith.divf %73, %74 : vector<16x1xf32>
    %76 = vector.broadcast %75 : vector<16x1xf32> to vector<16x32xf32>
    %77 = arith.subf %69, %76 : vector<16x32xf32>
    %78 = arith.mulf %77, %77 : vector<16x32xf32>
    %cst_46 = arith.constant dense<0.000000e+00> : vector<16xf32>
    %79 = vector.multi_reduction <add>, %78, %cst_46 [1] : vector<16x32xf32> to vector<16xf32>
    %80 = vector.shape_cast %79 : vector<16xf32> to vector<16x1xf32>
    %cst_47 = arith.constant 3.200000e+01 : f32
    %81 = vector.broadcast %cst_47 : f32 to vector<16x1xf32>
    %82 = arith.divf %80, %81 : vector<16x1xf32>
    %83 = vector.broadcast %75 : vector<16x1xf32> to vector<16x32xf32>
    %84 = arith.subf %69, %83 : vector<16x32xf32>
    %cst_48 = arith.constant 9.99999974E-6 : f32
    %85 = vector.broadcast %cst_48 : f32 to vector<16x1xf32>
    %86 = arith.addf %82, %85 : vector<16x1xf32>
    %87 = math.rsqrt %86 : vector<16x1xf32>
    %88 = vector.broadcast %87 : vector<16x1xf32> to vector<16x32xf32>
    %89 = arith.mulf %84, %88 : vector<16x32xf32>
    %90 = vector.broadcast %70 : vector<1x32xf32> to vector<16x32xf32>
    %91 = arith.mulf %89, %90 : vector<16x32xf32>
    %92 = vector.broadcast %71 : vector<1x32xf32> to vector<16x32xf32>
    %93 = arith.addf %91, %92 : vector<16x32xf32>
    %c0_49 = arith.constant 0 : index
    %c0_50 = arith.constant 0 : index
    %94 = vector.load %arg14[%c0_49, %c0_50] : memref<16x32xf32, #tpu.memory_space<vmem>>, vector<16x32xf32>
    tpu.vector_store %arg14[%c0_49, %c0_50], %93 {strides = array<i32>} : memref<16x32xf32, #tpu.memory_space<vmem>>, vector<16x32xf32>,
    return
  }
}

</mosaic_0001>

<bundles_post_ra>
// kernel: tpu_custom_call.1
= control target key start
LH: loop header
LB: loop body
LE: loop exit
PB: predicated region body
PF: predicated region fallthrough
CT: control target
= control target key end

     0   :  { %19 = vsyncpa [#allocation3], 0  ;;  %s1069_s0 = inlined_call_operand.hbm [shape: f32[2,1,8], index: 0, kind: input, shape index: {}]   ;;  %s1070_s1 = inlined_call_operand.hbm [shape: f32[2,8,32], index: 1, kind: input, shape index: {}]   ;;  %s1071_s2 = inlined_call_operand.vmem [shape: f32[32,32], index: 2, kind: input, shape index: {}]   ;;  %s1072_s3 = inlined_call_operand.vmem [shape: f32[1,32], index: 3, kind: input, shape index: {}]   ;;  %s1073_s4 = inlined_call_operand.vmem [shape: f32[32,32], index: 4, kind: input, shape index: {}]   ;;  %s1074_s5 = inlined_call_operand.vmem [shape: f32[1,32], index: 5, kind: input, shape index: {}]   ;;  %s1075_s6 = inlined_call_operand.vmem [shape: f32[1,32], index: 6, kind: input, shape index: {}]   ;;  %s1076_s7 = inlined_call_operand.vmem [shape: f32[1,32], index: 7, kind: input, shape index: {}]   ;;  %s1077_s8 = inlined_call_operand.vmem [shape: f32[32,64], index: 8, kind: input, shape index: {}]   ;;  %s1078_s9 = inlined_call_operand.vmem [shape: f32[1,64], index: 9, kind: input, shape index: {}]   ;;  %s1079_s10 = inlined_call_operand.vmem [shape: f32[64,32], index: 10, kind: input, shape index: {}]   ;;  %s1080_s11 = inlined_call_operand.vmem [shape: f32[1,32], index: 11, kind: input, shape index: {}]   ;;  %s1081_s12 = inlined_call_operand.vmem [shape: f32[1,32], index: 12, kind: input, shape index: {}]   ;;  %s1082_s13 = inlined_call_operand.vmem [shape: f32[1,32], index: 13, kind: input, shape index: {}]   ;;  %s1083_s14 = inlined_call_operand.hbm [shape: f32[16,32], index: 14, kind: output, shape index: {}]  }
   0x1   :  { %20 = vsyncpa [#allocation6], 0 }
   0x2   :  { %21 = vsyncpa [#allocation4], 0  ;;  %s837_s29 = smov [#allocation2]   ;;  %s765_s17 = scalar_lea.hbm %s1069_s0, 32 }
   0x3   :  { %s27_s30 = sshll.u32 %s837_s29, 4  ;;  %p766_p0 = scmp.ne.s32.totalorder %s1069_s0, %s765_s17  ;;  %s28_s30 = int_to_ptr.vmem [resolvable:$true] %s27_s30 }
   0x4   :  { %p769_p1 = scmp.lt.u32.totalorder %s765_s17, %s1069_s0 }
   0x6   :  { %p771_p2 = pnand %p769_p1, %p766_p0 }
   0x8   :  { %774 = shalt.err (!%p771_p2)
}
   0x9   :  { %s775_s22 = scalar_lea.vmem %s28_s30, 32  ;;  %p780_p4 = scmp.lt.s32.totalorder %s28_s30, %s28_s30 }
   0xa   :  { %p776_p3 = scmp.ne.s32.totalorder %s28_s30, %s775_s22  ;;  %p781_p5 = scmp.lt.s32.totalorder %s775_s22, %s775_s22 }
   0xc   :  { %p782_p6 = por %p781_p5, %p780_p4 }
   0xe   :  { %p783_p7 = pnand %p782_p6, %p776_p3 }
  0x10   :  { %786 = shalt.err (!%p783_p7)
}
  0x11   :  { %s838_s23 = smov 16   ;;  %s839_s24 = smov 1  }
  0x12   :  { %33 = dma.hbm_to_vmem [thread:$0]  %s1069_s0, 32, %s28_s30, [#allocation3], %s838_s23, %s838_s23, %s839_s24  }
  0x13   :  { %s840_s27 = smov [#allocation5]   ;;  %s787_s16 = scalar_lea.hbm %s1070_s1, 256 }
  0x14   :  { %s39_s28 = sshll.u32 %s840_s27, 4  ;;  %p788_p8 = scmp.ne.s32.totalorder %s1070_s1, %s787_s16  ;;  %s40_s28 = int_to_ptr.vmem [resolvable:$true] %s39_s28 }
  0x15   :  { %p791_p9 = scmp.lt.u32.totalorder %s787_s16, %s1070_s1 }
  0x17   :  { %p793_p10 = pnand %p791_p9, %p788_p8 }
  0x19   :  { %796 = shalt.err (!%p793_p10)
}
  0x1a   :  { %s797_s21 = scalar_lea.vmem %s40_s28, 256  ;;  %p802_p12 = scmp.lt.s32.totalorder %s40_s28, %s40_s28 }
  0x1b   :  { %p798_p11 = scmp.ne.s32.totalorder %s40_s28, %s797_s21  ;;  %p803_p13 = scmp.lt.s32.totalorder %s797_s21, %s797_s21 }
  0x1d   :  { %p804_p0 = por %p803_p13, %p802_p12 }
  0x1f   :  { %p805_p1 = pnand %p804_p0, %p798_p11 }
  0x21   :  { %808 = shalt.err (!%p805_p1)
}
  0x22   :  { %s841_s0 = smov 128   ;;  %s842_s30 = smov 8  }
  0x23   :  { %45 = dma.hbm_to_vmem [thread:$0]  %s1070_s1, 256, %s40_s28, [#allocation6], %s841_s0, %s841_s0, %s842_s30  }
  0x24   :  { %831 = dma.done.wait [#allocation3], 32  }
  0x25   :  { %832 = vsyncadd [#allocation3], 4294967264 }
  0x26   :  { %833 = dma.done.wait [#allocation6], 256  }
  0x27   :  { %834 = vsyncadd [#allocation6], 4294967040  ;;  %vm89_vm0 = vcmask 261120   ;;  %v78_v0 = vld [vmem:[%s1071_s2] sm:$0xff]  ;;  %v79_v1 = vld [vmem:[%s1071_s2 + $0x8] sm:$0xff]  ;;  %vm193_vm1 = vcmask 57344   ;;  %v206_v34 = vlaneseq }
  0x28   :  { %v80_v2 = vld [vmem:[%s1071_s2 + $0x10] sm:$0xff]  ;;  %v708_v3 = vpack.c.bf16 %v79_v1, %v78_v0  ;;  %v81_v4 = vld [vmem:[%s1071_s2 + $0x18] sm:$0xff]  ;;  %v960_v5 = vld [vmem:[#allocation5] sm:$0xff]  ;;  %v843_v9 = vmov 0.0   ;;  %v844_v42 = vmov nan   ;;  %vm462_vm6 = vcmask 523264  }
  0x29   :  { %v712_v6 = vpack.c.bf16 %v81_v4, %v80_v2  ;;  %664 = vmatprep.mubr.msk.f32.mxu0 %vm89_vm0, %v960_v5  ;;  %v185_v7 = vld [vmem:[#allocation2] sm:$0x1]  ;;  %v186_v8 = vld [vmem:[#allocation2 + $0x1] sm:$0x1]  ;;  %v77_v14 = vld [vmem:[#allocation5 + $0x8] sm:$0xff]  ;;  %v207_v39 = vshrl.u32 %v206_v34, 7 }
  0x2a   :  { %709 = vmatprep.subr.bf16.mxu0 %v708_v3  ;;  %vm187_vm2 = vcmp.ne.f32.partialorder %v185_v7, 0.0  ;;  %vm188_vm3 = vcmp.ne.f32.partialorder %v186_v8, 0.0  ;;  %v214_v15 = vld [vmem:[%s1073_s4] sm:$0xff]  ;;  %v215_v16 = vld [vmem:[%s1073_s4 + $0x8] sm:$0xff]  ;;  %v216_v18 = vld [vmem:[%s1073_s4 + $0x10] sm:$0xff]  ;;  %s845_s17 = smov [#allocation7]  }
  0x2b   :  { %711 = vmatpush3.bf16.msra.mxu0 %v708_v3  ;;  %v613_v10 = vsel %vm187_vm2, 1.0, %v843_v9  ;;  %v614_v11 = vsel %vm188_vm3, 1.0, %v843_v9  ;;  %v716_v17 = vpack.c.bf16 %v215_v16, %v214_v15  ;;  %v217_v19 = vld [vmem:[%s1073_s4 + $0x18] sm:$0xff]  ;;  %v610_v21 = vld [vmem:[%s1072_s3] ss:$0 sm:$0xff]  ;;  %v208_v46 = vsub.s32 0, %v207_v39 }
  0x2c   :  { %713 = vmatprep.subr.bf16.mxu0 %v712_v6  ;;  %v194_v12 = vsel %vm193_vm1, %v613_v10, 0.0  ;;  %v197_v13 = vsel %vm193_vm1, %v614_v11, 0.0  ;;  %v720_v20 = vpack.c.bf16 %v217_v19, %v216_v18  ;;  %v615_v52 = vld [vmem:[%s1074_s5] ss:$0 sm:$0xff]  ;;  %v354_v8 = vld [vmem:[%s1077_s8 + $0x8] sm:$0xff]  ;;  %v355_v10 = vld [vmem:[%s1077_s8 + $0x10] sm:$0xff] }
  0x2d   :  { %195 = vadd.xlane.f32.xlu0 %v194_v12  ;;  %717 = vmatprep.subr.bf16.mxu1 %v716_v17  ;;  %v353_v7 = vld [vmem:[%s1077_s8] sm:$0xff]  ;;  %v356_v11 = vld [vmem:[%s1077_s8 + $0x18] sm:$0xff]  ;;  %v449_v15 = vld [vmem:[%s1079_s10 + $0x10] sm:$0xff]  ;;  %s597_s18 = sshll.u32 %s845_s17, 4  ;;  %s598_s18 = int_to_ptr.vmem [resolvable:$true] %s597_s18 }
  0x2e   :  { %719 = vmatpush3.bf16.msra.mxu1 %v716_v17  ;;  %v724_v9 = vpack.c.bf16 %v354_v8, %v353_v7  ;;  %v728_v12 = vpack.c.bf16 %v356_v11, %v355_v10  ;;  %v450_v17 = vld [vmem:[%s1079_s10 + $0x18] sm:$0xff]  ;;  %v451_v19 = vld [vmem:[%s1079_s10 + $0x20] sm:$0xff]  ;;  %s809_s19 = scalar_lea.vmem %s598_s18, 256  ;;  %p814_p3 = scmp.lt.s32.totalorder %s598_s18, %s598_s18 }
  0x2f   :  { %715 = vmatpush3.bf16.msra.mxu0 %v712_v6  ;;  %721 = vmatprep.subr.bf16.mxu1 %v720_v20  ;;  %v736_v18 = vpack.c.bf16 %v450_v17, %v449_v15  ;;  %v454_v39 = vld [vmem:[%s1079_s10 + $0x38] sm:$0xff]  ;;  %v626_v10 = vld [vmem:[%s1081_s12] ss:$0 sm:$0xff]  ;;  %p810_p2 = scmp.ne.s32.totalorder %s598_s18, %s809_s19  ;;  %p815_p4 = scmp.lt.s32.totalorder %s809_s19, %s809_s19 }
  0x30   :  { %725 = vmatprep.subr.bf16.mxu0 %v724_v9 }
  0x31   :  { %198 = vadd.xlane.f32.xlu0 %v197_v13  ;;  %v447_v13 = vld [vmem:[%s1079_s10] sm:$0xff]  ;;  %p816_p5 = por %p815_p4, %p814_p3 }
  0x32   :  { %665 = vmatmul.mubr.msk.f32.vlgmr.msra.gmra.mrb[0].mxu0 %vm89_vm0, %v77_v14  ;;  %723 = vmatpush3.bf16.msra.mxu1 %v720_v20  ;;  %v452_v20 = vld [vmem:[%s1079_s10 + $0x28] sm:$0xff] }
  0x33   :  { %727 = vmatpush3.bf16.msra.mxu0 %v724_v9  ;;  %p817_p6 = pnand %p816_p5, %p810_p2 }
  0x34   :  { %729 = vmatprep.subr.bf16.mxu0 %v728_v12 }
  0x37   :  { %731 = vmatpush3.bf16.msra.mxu0 %v728_v12 }
  0xba   :  { %v196_v25 = vpop.xlane.xlu0 %195 }
  0xbb   :  { %vm200_vm5 = vcmp.gt.f32.partialorder %v196_v25, 0.0 }
  0xbc   :  { %v202_v47 = vsel %vm200_vm5, 1.0, %v844_v42 }
  0xbe   :  { %v199_v33 = vpop.xlane.xlu0 %198 }
  0xbf   :  { %vm201_vm4 = vcmp.gt.f32.partialorder %v199_v33, 0.0 }
  0xc0   :  { %v203_v43 = vsel %vm201_vm4, 1.0, %v844_v42 }
 0x105   :  { %v666_v22 = vpop.f32.mrb[0].mxu0 }
 0x106   :  { %v168_v23 = vadd.f32 %v666_v22, %v610_v21  ;;  %v162_v24 = vpop.f32.mrb[1].mxu0 }
 0x107   :  { %v163_v26 = vadd.f32 %v610_v21, %v162_v24  ;;  %v740_v21 = vpack.c.bf16 %v452_v20, %v451_v19 }
 0x108   :  { %v178_v27 = vsel %vm89_vm0, %v168_v23, 0.0 }
 0x109   :  { %v179_v28 = vrot.slane %v178_v27, 4  ;;  %v171_v29 = vsel %vm89_vm0, %v163_v26, 0.0 }
 0x10a   :  { %v172_v30 = vrot.slane %v171_v29, 4 }
 0x10b   :  { %v180_v31 = vadd.f32 %v179_v28, %v178_v27 }
 0x10c   :  { %v173_v32 = vadd.f32 %v172_v30, %v171_v29  ;;  %v618_v29 = vld [vmem:[%s1075_s6] ss:$0 sm:$0xff] }
 0x10d   :  { %v181_v35 = vrot.slane %v180_v31, 2 }
 0x10e   :  { %v174_v36 = vrot.slane %v173_v32, 2 }
 0x10f   :  { %v182_v37 = vadd.f32 %v181_v35, %v180_v31  ;;  %v619_v31 = vld [vmem:[%s1076_s7] ss:$0 sm:$0xff] }
 0x110   :  { %v175_v38 = vadd.f32 %v174_v36, %v173_v32 }
 0x111   :  { %v183_v40 = vrot.slane %v182_v37, 1 }
 0x112   :  { %v176_v41 = vrot.slane %v175_v38, 1 }
 0x113   :  { %v184_v44 = vadd.f32 %v183_v40, %v182_v37 }
 0x114   :  { %v177_v45 = vadd.f32 %v176_v41, %v175_v38  ;;  %v453_v38 = vld [vmem:[%s1079_s10 + $0x30] sm:$0xff]  ;;  %v620_v41 = vld [vmem:[%s1078_s9] ss:$0 sm:$0xff] }
 0x115   :  { %v205_v48 = vmul.f32 %v203_v43, %v184_v44  ;;  %v744_v40 = vpack.c.bf16 %v454_v39, %v453_v38 }
 0x116   :  { %v204_v49 = vmul.f32 %v202_v47, %v177_v45 }
 0x117   :  { %v213_v51 = vrot.slane %v205_v48, %v208_v46  ;;  %v623_v48 = vld [vmem:[%s1080_s11] ss:$0 sm:$0xff] }
 0x118   :  { %v209_v50 = vrot.slane %v204_v49, %v208_v46 }
 0x11a   :  { %675 = vmatprep.mubr.msk.f32.mxu1 %vm89_vm0, %v209_v50 }
 0x11b   :  { %676 = vmatmul.mubr.msk.f32.vlgmr.msra.gmra.mrb[0].mxu1 %vm89_vm0, %v213_v51 }
 0x1ee   :  { %v677_v53 = vpop.f32.mrb[0].mxu1 }
 0x1ef   :  { %v297_v54 = vpop.f32.mrb[1].mxu1  ;;  %v303_v55 = vadd.f32 %v677_v53, %v615_v52 }
 0x1f0   :  { %v298_v56 = vadd.f32 %v615_v52, %v297_v54 }
 0x1f1   :  { %v307_v59 = vadd.f32 %v303_v55, %v77_v14  ;;  %v448_v14 = vld [vmem:[%s1079_s10 + $0x8] sm:$0xff] }
 0x1f2   :  { %v306_v57 = vadd.f32 %v298_v56, %v960_v5  ;;  %v732_v16 = vpack.c.bf16 %v448_v14, %v447_v13  ;;  %v627_v14 = vld [vmem:[%s1082_s13] ss:$0 sm:$0xff] }
 0x1f3   :  { %v313_v60 = vsel %vm89_vm0, %v307_v59, 0.0 }
 0x1f4   :  { %v310_v58 = vsel %vm89_vm0, %v306_v57, 0.0  ;;  %733 = vmatprep.subr.bf16.mxu1 %v732_v16 }
 0x1f5   :  { %311 = vadd.xlane.f32.xlu1 %v310_v58  ;;  %735 = vmatpush3.bf16.msra.mxu1 %v732_v16 }
 0x1f6   :  { %737 = vmatprep.subr.bf16.mxu1 %v736_v18 }
 0x1f9   :  { %314 = vadd.xlane.f32.xlu1 %v313_v60  ;;  %739 = vmatpush3.bf16.msra.mxu1 %v736_v18 }
 0x1fa   :  { %741 = vmatprep.subr.bf16.mxu1 %v740_v21 }
 0x1fd   :  { %743 = vmatpush3.bf16.msra.mxu1 %v740_v21 }
 0x1fe   :  { %745 = vmatprep.subr.bf16.mxu1 %v744_v40 }
 0x201   :  { %747 = vmatpush3.bf16.msra.mxu1 %v744_v40 }
 0x282   :  { %v312_v61 = vpop.xlane.xlu1 %311 }
 0x283   :  { %v317_v62 = vmul.f32 0.03125, %v312_v61 }
 0x285   :  { %v319_v63 = vsub.f32 %v306_v57, %v317_v62 }
 0x286   :  { %v315_v0 = vpop.xlane.xlu1 %314 }
 0x287   :  { %v318_v1 = vmul.f32 0.03125, %v315_v0  ;;  %v321_v2 = vmul.f32 %v319_v63, %v319_v63 }
 0x289   :  { %v320_v3 = vsub.f32 %v307_v59, %v318_v1  ;;  %v323_v4 = vsel %vm89_vm0, %v321_v2, 0.0 }
 0x28a   :  { %324 = vadd.xlane.f32.xlu0 %v323_v4 }
 0x28b   :  { %v322_v6 = vmul.f32 %v320_v3, %v320_v3 }
 0x28d   :  { %v326_v5 = vsel %vm89_vm0, %v322_v6, 0.0 }
 0x28e   :  { %327 = vadd.xlane.f32.xlu1 %v326_v5 }
 0x317   :  { %v325_v22 = vpop.xlane.xlu0 %324 }
 0x318   :  { %v329_v23 = vmul.f32 0.03125, %v325_v22 }
 0x31a   :  { %v331_v24 = vadd.f32 1e-05, %v329_v23 }
 0x31b   :  { %v328_v25 = vpop.xlane.xlu1 %327 }
 0x31c   :  { %757 = vrsqrt.f32 %v331_v24  ;;  %v330_v26 = vmul.f32 0.03125, %v328_v25 }
 0x31e   :  { %v332_v27 = vadd.f32 1e-05, %v330_v26 }
 0x320   :  { %759 = vrsqrt.f32 %v332_v27 }
 0x326   :  { %v758_v28 = vpop.eup %757 }
 0x327   :  { %v335_v30 = vmul.f32 %v758_v28, %v319_v63 }
 0x329   :  { %v343_v32 = vmul.f32 %v618_v29, %v335_v30 }
 0x32a   :  { %v760_v33 = vpop.eup %759 }
 0x32b   :  { %v336_v34 = vmul.f32 %v760_v33, %v320_v3  ;;  %v351_v35 = vadd.f32 %v619_v31, %v343_v32 }
 0x32d   :  { %v344_v36 = vmul.f32 %v618_v29, %v336_v34  ;;  %686 = vmatprep.mubr.msk.f32.mxu0 %vm89_vm0, %v351_v35 }
 0x32f   :  { %v352_v37 = vadd.f32 %v619_v31, %v344_v36 }
 0x331   :  { %687 = vmatmul.mubr.msk.f32.vlgmr.msra.gmra.mrb[2].mxu0 %vm89_vm0, %v352_v37 }
 0x404   :  { %v688_v42 = vpop.f32.mrb[2].mxu0 }
 0x405   :  { %v442_v43 = vadd.f32 %v688_v42, %v620_v41  ;;  %v436_v44 = vpop.f32.mrb[3].mxu0 }
 0x406   :  { %v437_v45 = vadd.f32 %v620_v41, %v436_v44 }
 0x407   :  { %v446_v47 = vmax.f32 %v442_v43, 0.0 }
 0x408   :  { %v445_v46 = vmax.f32 %v437_v45, 0.0 }
 0x40a   :  { %705 = vmatprep.mubr.msk.f32.mxu1 %vm462_vm6, %v445_v46 }
 0x40b   :  { %706 = vmatmul.mubr.msk.f32.vlgmr.msra.gmra.mrb[2].mxu1 %vm462_vm6, %v446_v47 }
 0x4de   :  { %v707_v49 = vpop.f32.mrb[2].mxu1 }
 0x4df   :  { %v541_v50 = vadd.f32 %v707_v49, %v623_v48  ;;  %v535_v51 = vpop.f32.mrb[3].mxu1 }
 0x4e0   :  { %v536_v52 = vadd.f32 %v623_v48, %v535_v51 }
 0x4e1   :  { %v545_v53 = vadd.f32 %v541_v50, %v352_v37 }
 0x4e2   :  { %v544_v54 = vadd.f32 %v536_v52, %v351_v35 }
 0x4e3   :  { %v551_v55 = vsel %vm89_vm0, %v545_v53, 0.0 }
 0x4e4   :  { %552 = vadd.xlane.f32.xlu1 %v551_v55  ;;  %v548_v56 = vsel %vm89_vm0, %v544_v54, 0.0 }
 0x4e5   :  { %549 = vadd.xlane.f32.xlu0 %v548_v56 }
 0x571   :  { %v553_v57 = vpop.xlane.xlu1 %552 }
 0x572   :  { %v555_v58 = vmul.f32 0.03125, %v553_v57  ;;  %v550_v59 = vpop.xlane.xlu0 %549 }
 0x573   :  { %v554_v60 = vmul.f32 0.03125, %v550_v59 }
 0x574   :  { %v557_v61 = vsub.f32 %v545_v53, %v555_v58 }
 0x575   :  { %v556_v62 = vsub.f32 %v544_v54, %v554_v60 }
 0x576   :  { %v559_v63 = vmul.f32 %v557_v61, %v557_v61 }
 0x577   :  { %v558_v0 = vmul.f32 %v556_v62, %v556_v62 }
 0x578   :  { %v563_v1 = vsel %vm89_vm0, %v559_v63, 0.0 }
 0x579   :  { %564 = vadd.xlane.f32.xlu1 %v563_v1  ;;  %v560_v2 = vsel %vm89_vm0, %v558_v0, 0.0 }
 0x57a   :  { %561 = vadd.xlane.f32.xlu0 %v560_v2 }
 0x606   :  { %v565_v3 = vpop.xlane.xlu1 %564 }
 0x607   :  { %v567_v4 = vmul.f32 0.03125, %v565_v3  ;;  %v562_v6 = vpop.xlane.xlu0 %561 }
 0x608   :  { %v566_v5 = vmul.f32 0.03125, %v562_v6 }
 0x609   :  { %v569_v7 = vadd.f32 1e-05, %v567_v4 }
 0x60a   :  { %v568_v8 = vadd.f32 1e-05, %v566_v5 }
 0x60b   :  { %761 = vrsqrt.f32 %v569_v7 }
 0x60c   :  { %763 = vrsqrt.f32 %v568_v8 }
 0x615   :  { %v762_v9 = vpop.eup %761 }
 0x616   :  { %v764_v11 = vpop.eup %763  ;;  %v573_v12 = vmul.f32 %v762_v9, %v557_v61 }
 0x617   :  { %v572_v13 = vmul.f32 %v764_v11, %v556_v62 }
 0x618   :  { %v581_v15 = vmul.f32 %v626_v10, %v573_v12 }
 0x619   :  { %v580_v16 = vmul.f32 %v626_v10, %v572_v13 }
 0x61a   :  { %v589_v17 = vadd.f32 %v627_v14, %v581_v15 }
 0x61b   :  { %v588_v18 = vadd.f32 %v627_v14, %v580_v16 }
 0x61c   :  { %591 = vst.msk [vmem:[#allocation7 + $0x8] sm:$0xff] %vm89_vm0, %v589_v17 }
 0x61d   :  { %590 = vst.msk [vmem:[#allocation7] sm:$0xff] %vm89_vm0, %v588_v18 }
 0x61e   :  { %820 = shalt.err (!%p817_p6)
}
 0x61f   :  { %s821_s20 = scalar_lea.hbm %s1083_s14, 256 }
 0x620   :  { %p822_p7 = scmp.ne.s32.totalorder %s1083_s14, %s821_s20  ;;  %p825_p8 = scmp.lt.u32.totalorder %s821_s20, %s1083_s14 }
 0x622   :  { %p827_p9 = pnand %p825_p8, %p822_p7 }
 0x624   :  { %830 = shalt.err (!%p827_p9)
}
 0x625   :  { %603 = dma.vmem_to_hbm [thread:$0]  %s598_s18, 256, %s1083_s14, [#allocation4], %s841_s0, %s841_s0, %s842_s30  }
 0x626   :  { %835 = dma.done.wait [#allocation4], 256  }
 0x627   :  { %836 = vsyncadd [#allocation4], 4294967040 }
 0x628   :  { %607 = vsyncpa [#allocation3], 1 }
 0x629   :  { %608 = vsyncpa [#allocation6], 1 }
 0x62a   :  { %609 = vsyncpa [#allocation4], 1 }

</bundles_post_ra>
